<compile_context>
chip_gen: v7x
topology: tpu7x:2x2x1
jax: 0.10.0
libtpu: 0.0.40
codegen_flags: <defaults>
</compile_context>

<pallas_src>
import functools

import jax
import jax.numpy as jnp
from jax.experimental import pallas as pl
from jax.experimental.pallas import tpu as pltpu


def _identity_block_kernel(
    x_ref,      # (Ci, N*L) f32   channels-major, batch*length on lanes
    w1_ref,     # (Co, K*Ci) f32  conv1 weight, contraction axis = (k, ci)
    w2_ref,     # (Co, K*Co) f32  conv2 weight, contraction axis = (k, co)
    p_ref,      # (Co, 6)    f32  packed [g1, be1, g2, be2, g3, be3]
    out_ref,    # (Co, N*L) f32
    *, K, dilation, pad, L, eps, diff_size,
):
    Ci, NL = x_ref.shape
    Co = out_ref.shape[0]
    inv_cnt = 1.0 / float(NL)

    # Position of each lane inside its length-L segment (batches are laid
    # back-to-back along the lane axis).  Masks (one per tap shift) are built
    # once and reused by both convs -- they depend only on the shift.
    seg = jax.lax.broadcasted_iota(jnp.int32, (1, NL), 1) % L
    shifts = [k * dilation - pad for k in range(K)]
    masks = []
    for s in shifts:
        if s == 0:
            masks.append(None)
        elif s > 0:
            masks.append(seg < (L - s))
        else:
            masks.append(seg >= (-s))

    def stacked_taps(v):
        # tap_s[c, n*L + l] = v[c, n*L + (l + s)] if 0 <= l + s < L else 0,
        # stacked along sublanes -> (K*C, NL) so the conv is ONE matmul.
        parts = []
        for s, m in zip(shifts, masks):
            t = v if s == 0 else pltpu.roll(v, shift=(-s) % NL, axis=1)
            if m is not None:
                t = jnp.where(m, t, 0.0)
            parts.append(t)
        return jnp.concatenate(parts, axis=0)

    def bn(h, g, be):
        # Training-mode BatchNorm1d, biased variance, single pass over h:
        # out = h * scale + (beta - mean * scale).
        mean = jnp.sum(h, axis=1, keepdims=True) * inv_cnt          # (Co, 1)
        ex2 = jnp.sum(h * h, axis=1, keepdims=True) * inv_cnt       # (Co, 1)
        var = jnp.maximum(ex2 - mean * mean, 0.0)
        scale = jax.lax.rsqrt(var + eps) * g
        shift = be - mean * scale
        return h * scale + shift

    p = p_ref[...]
    g1, be1 = p[:, 0:1], p[:, 1:2]
    g2, be2 = p[:, 2:3], p[:, 3:4]
    g3, be3 = p[:, 4:5], p[:, 5:6]

    x = x_ref[...]

    # conv1 (bias exactly cancelled by train-mode BN) -> bn1 -> relu
    h1 = jnp.dot(w1_ref[...], stacked_taps(x),
                 preferred_element_type=jnp.float32)
    h1 = jnp.maximum(bn(h1, g1, be1), 0.0)

    # conv2 -> bn2
    h2 = jnp.dot(w2_ref[...], stacked_taps(h1),
                 preferred_element_type=jnp.float32)
    h2 = bn(h2, g2, be2)

    # residual: x (channel-repeated if Ci != Co) added directly (no matmul)
    res = jnp.concatenate([x, x], axis=0) if diff_size else x
    out_ref[...] = jnp.maximum(bn(h2 + res, g3, be3), 0.0)


def identity_block(x, params, *, kernel_size, stride, dilation, eps):
    """x: (N, Ci, L) float32.  Returns (N, Co, L) float32 (train-mode BN)."""
    w1, _b1, g1, be1, w2, _b2, g2, be2, g3, be3 = params
    N, Ci, L = x.shape
    Co = w1.shape[0]
    K = kernel_size
    pad = K // 2
    # Residual add requires length-preserving convs (as in the module's usage).
    assert stride == 1 and dilation * (K - 1) == 2 * pad, \
        "IdentityBlock residual requires length-preserving convs"
    diff_size = Ci != Co
    if diff_size:
        assert Co == 2 * Ci, "x.repeat(1, 2, 1) residual requires Co == 2*Ci"
    NL = N * L

    # ---- layout glue (cheap XLA ops): channels-major, (N, L) onto lanes ----
    x_t = jnp.transpose(x, (1, 0, 2)).reshape(Ci, NL).astype(jnp.float32)
    # Conv weights (Co, Cin, K) -> (Co, K*Cin) matching the stacked-tap order.
    w1_r = jnp.transpose(w1, (0, 2, 1)).reshape(Co, K * Ci).astype(jnp.float32)
    w2_r = jnp.transpose(w2, (0, 2, 1)).reshape(Co, K * Co).astype(jnp.float32)
    # Pack the six BN gamma/beta vectors into one (Co, 6) input.
    p_vec = jnp.stack([g1, be1, g2, be2, g3, be3], axis=1).astype(jnp.float32)

    kernel = functools.partial(_identity_block_kernel, K=K, dilation=dilation,
                               pad=pad, L=L, eps=float(eps),
                               diff_size=diff_size)

    # VMEM budget: live (·, N*L) f32 slabs (input, stacked taps, activations)
    # plus weights, with margin.  Cap at ~80% of this generation's physical
    # VMEM (v7x has only 64 MiB per TensorCore).
    slab_rows = Ci + K * Ci + K * Co + 6 * Co
    resident_bytes = 4 * (slab_rows * NL + Co * (K * Ci + K * Co + 8))
    try:
        vmem_cap = int(pltpu.get_tpu_info().vmem_capacity_bytes)
    except Exception:
        vmem_cap = 64 << 20  # conservative fallback (v7x per-core VMEM)
    vmem_limit = int(min(max(3 * resident_bytes, 32 << 20),
                         (vmem_cap * 4) // 5))

    out_flat = pl.pallas_call(
        kernel,
        out_shape=jax.ShapeDtypeStruct((Co, NL), jnp.float32),
        in_specs=[pl.BlockSpec(memory_space=pltpu.MemorySpace.VMEM)] * 4,
        out_specs=pl.BlockSpec(memory_space=pltpu.MemorySpace.VMEM),
        compiler_params=pltpu.CompilerParams(vmem_limit_bytes=vmem_limit),
    )(x_t, w1_r, w2_r, p_vec)

    return jnp.transpose(out_flat.reshape(Co, N, L), (1, 0, 2))


def _reference(x, params, *, kernel_size, stride, dilation, eps):
    """Pure-JAX reference (same math as the PyTorch forward in train mode)."""
    w1, b1, g1, be1, w2, b2, g2, be2, g3, be3 = params
    pad = kernel_size // 2
    diff_size = x.shape[1] != w1.shape[0]

    def conv(h, w, b):
        y = jax.lax.conv_general_dilated(
            h, w, window_strides=(stride,), padding=[(pad, pad)],
            rhs_dilation=(dilation,), dimension_numbers=("NCH", "OIH", "NCH"))
        return y + b[None, :, None]

    def bn(h, g, be):
        m = jnp.mean(h, axis=(0, 2), keepdims=True)
        v = jnp.mean((h - m) ** 2, axis=(0, 2), keepdims=True)
        return (h - m) / jnp.sqrt(v + eps) * g[None, :, None] + be[None, :, None]

    out = jax.nn.relu(bn(conv(x, w1, b1), g1, be1))
    out = bn(conv(out, w2, b2), g2, be2)
    out = out + (jnp.concatenate([x, x], axis=1) if diff_size else x)
    return jax.nn.relu(bn(out, g3, be3))


if __name__ == "__main__":
    # in_channels=4, out_channels=8 (diff_size residual path), k=3, stride=1,
    # dilation=1, use_bias=True, eps=1e-5; batch=2, length=128 so the flattened
    # lane axis (N*L = 256) is a multiple of 128 (lane-dense stores).
    N, Ci, Co, L = 2, 4, 8, 128
    K, stride, dilation, eps = 3, 1, 1, 1e-5

    key = jax.random.PRNGKey(0)
    k_w1, k_w2, k_g, k_x = jax.random.split(key, 4)

    # Conv weights: normal(0, (C_in*K)^(-1/2)) as in the module __init__; bias=0.
    w1 = jax.random.normal(k_w1, (Co, Ci, K), jnp.float32) * (Ci * K) ** -0.5
    b1 = jnp.zeros((Co,), jnp.float32)
    w2 = jax.random.normal(k_w2, (Co, Co, K), jnp.float32) * (Co * K) ** -0.5
    b2 = jnp.zeros((Co,), jnp.float32)
    # BatchNorm affine params: mildly perturbed to exercise the affine path.
    kg1, kg2, kg3 = jax.random.split(k_g, 3)
    g1 = 1.0 + 0.1 * jax.random.normal(kg1, (Co,), jnp.float32)
    be1 = 0.1 * jax.random.normal(kg2, (Co,), jnp.float32)
    g2 = 1.0 + 0.1 * jax.random.normal(kg3, (Co,), jnp.float32)
    be2 = jnp.zeros((Co,), jnp.float32)
    g3 = jnp.ones((Co,), jnp.float32)
    be3 = jnp.zeros((Co,), jnp.float32)
    params = (w1, b1, g1, be1, w2, b2, g2, be2, g3, be3)

    x = jax.random.normal(k_x, (N, Ci, L), jnp.float32)

    out = identity_block(x, params, kernel_size=K, stride=stride,
                         dilation=dilation, eps=eps)
    out = jax.block_until_ready(out)

    ref = jax.block_until_ready(
        _reference(x, params, kernel_size=K, stride=stride,
                   dilation=dilation, eps=eps))
    assert out.shape == (N, Co, L), out.shape
    err = float(jnp.max(jnp.abs(out - ref)))
    assert jnp.allclose(out, ref, atol=2e-3, rtol=2e-3), err

    print("KERNEL_OK")
</pallas_src>

<mosaic_0001>
module attributes {stable_mosaic.version = 11 : i64} {
  func.func @_identity_block_kernel(%arg0: memref<4x256xf32, #tpu.memory_space<vmem>>, %arg1: memref<8x12xf32, #tpu.memory_space<vmem>>, %arg2: memref<8x24xf32, #tpu.memory_space<vmem>>, %arg3: memref<8x6xf32, #tpu.memory_space<vmem>>, %arg4: memref<8x256xf32, #tpu.memory_space<vmem>>) attributes {dimension_semantics = [], scalar_prefetch = 0 : i64, scratch_operands = 0 : i64, tpu.core_type = #tpu.core_type<tc>} {
    %0 = tpu.iota {dimensions = array<i32: 1>} : vector<1x256xi32>
    %c128_i32 = arith.constant 128 : i32
    %c0_i32 = arith.constant 0 : i32
    %1 = arith.cmpi eq, %c128_i32, %c0_i32 : i32
    %c1_i32 = arith.constant 1 : i32
    %2 = arith.select %1, %c1_i32, %c128_i32 : i32
    %3 = vector.broadcast %2 : i32 to vector<1x256xi32>
    %4 = arith.remsi %0, %3 : vector<1x256xi32>
    %c0_i32_0 = arith.constant 0 : i32
    %5 = vector.broadcast %c0_i32_0 : i32 to vector<1x256xi32>
    %6 = arith.cmpi ne, %4, %5 : vector<1x256xi32>
    %c0_i32_1 = arith.constant 0 : i32
    %7 = vector.broadcast %c0_i32_1 : i32 to vector<1x256xi32>
    %8 = arith.cmpi slt, %4, %7 : vector<1x256xi32>
    %c0_i32_2 = arith.constant 0 : i32
    %9 = arith.cmpi slt, %2, %c0_i32_2 : i32
    %10 = vector.broadcast %9 : i1 to vector<1x256xi1>
    %11 = vector.broadcast %10 : vector<1x256xi1> to vector<1x256xi1>
    %12 = arith.xori %8, %11 : vector<1x256xi1>
    %13 = arith.andi %12, %6 : vector<1x256xi1>
    %14 = vector.broadcast %2 : i32 to vector<1x256xi32>
    %15 = arith.addi %4, %14 : vector<1x256xi32>
    %16 = arith.select %13, %15, %4 : vector<1x256xi1>, vector<1x256xi32>
    %c1_i32_3 = arith.constant 1 : i32
    %17 = vector.broadcast %c1_i32_3 : i32 to vector<1x256xi32>
    %18 = arith.cmpi sge, %16, %17 : vector<1x256xi32>
    %c127_i32 = arith.constant 127 : i32
    %19 = vector.broadcast %c127_i32 : i32 to vector<1x256xi32>
    %20 = arith.cmpi slt, %16, %19 : vector<1x256xi32>
    %c0 = arith.constant 0 : index
    %c0_4 = arith.constant 0 : index
    %21 = vector.load %arg3[%c0, %c0_4] : memref<8x6xf32, #tpu.memory_space<vmem>>, vector<8x6xf32>
    %22 = vector.extract_strided_slice %21 {offsets = [0, 0], sizes = [8, 1], strides = [1, 1]} : vector<8x6xf32> to vector<8x1xf32>
    %23 = vector.extract_strided_slice %21 {offsets = [0, 1], sizes = [8, 1], strides = [1, 1]} : vector<8x6xf32> to vector<8x1xf32>
    %24 = vector.extract_strided_slice %21 {offsets = [0, 2], sizes = [8, 1], strides = [1, 1]} : vector<8x6xf32> to vector<8x1xf32>
    %25 = vector.extract_strided_slice %21 {offsets = [0, 3], sizes = [8, 1], strides = [1, 1]} : vector<8x6xf32> to vector<8x1xf32>
    %26 = vector.extract_strided_slice %21 {offsets = [0, 4], sizes = [8, 1], strides = [1, 1]} : vector<8x6xf32> to vector<8x1xf32>
    %27 = vector.extract_strided_slice %21 {offsets = [0, 5], sizes = [8, 1], strides = [1, 1]} : vector<8x6xf32> to vector<8x1xf32>
    %c0_5 = arith.constant 0 : index
    %c0_6 = arith.constant 0 : index
    %28 = vector.load %arg0[%c0_5, %c0_6] : memref<4x256xf32, #tpu.memory_space<vmem>>, vector<4x256xf32>
    %c0_7 = arith.constant 0 : index
    %c0_8 = arith.constant 0 : index
    %29 = vector.load %arg1[%c0_7, %c0_8] : memref<8x12xf32, #tpu.memory_space<vmem>>, vector<8x12xf32>
    %c1_i32_9 = arith.constant 1 : i32
    %30 = tpu.dynamic_rotate %28 by %c1_i32_9 dim 1 : vector<4x256xf32>, i32 -> vector<4x256xf32>
    %cst = arith.constant 0.000000e+00 : f32
    %31 = vector.shape_cast %18 : vector<1x256xi1> to vector<1x256xi1>
    %32 = vector.broadcast %31 : vector<1x256xi1> to vector<4x256xi1>
    %33 = vector.broadcast %cst : f32 to vector<4x256xf32>
    %34 = arith.select %32, %30, %33 : vector<4x256xi1>, vector<4x256xf32>
    %c255_i32 = arith.constant 255 : i32
    %35 = tpu.dynamic_rotate %28 by %c255_i32 dim 1 : vector<4x256xf32>, i32 -> vector<4x256xf32>
    %cst_10 = arith.constant 0.000000e+00 : f32
    %36 = vector.shape_cast %20 : vector<1x256xi1> to vector<1x256xi1>
    %37 = vector.broadcast %36 : vector<1x256xi1> to vector<4x256xi1>
    %38 = vector.broadcast %cst_10 : f32 to vector<4x256xf32>
    %39 = arith.select %37, %35, %38 : vector<4x256xi1>, vector<4x256xf32>
    %40 = tpu.concatenate %34, %28, %39 in 0 : vector<4x256xf32>, vector<4x256xf32>, vector<4x256xf32> -> vector<12x256xf32>
    %cst_11 = arith.constant dense<0.000000e+00> : vector<8x256xf32>
    %41 = tpu.matmul %29, %40, %cst_11 {dimension_numbers = #tpu.dot_dimension_numbers<[1], [0], [0], [1], [0, 0, 1, 1], [], []>} : vector<8x12xf32>, vector<12x256xf32>, vector<8x256xf32> -> vector<8x256xf32>
    %cst_12 = arith.constant dense<0.000000e+00> : vector<8xf32>
    %42 = vector.multi_reduction <add>, %41, %cst_12 [1] : vector<8x256xf32> to vector<8xf32>
    %43 = vector.shape_cast %42 : vector<8xf32> to vector<8x1xf32>
    %cst_13 = arith.constant 3.906250e-03 : f32
    %44 = vector.broadcast %cst_13 : f32 to vector<8x1xf32>
    %45 = arith.mulf %43, %44 : vector<8x1xf32>
    %46 = arith.mulf %41, %41 : vector<8x256xf32>
    %cst_14 = arith.constant dense<0.000000e+00> : vector<8xf32>
    %47 = vector.multi_reduction <add>, %46, %cst_14 [1] : vector<8x256xf32> to vector<8xf32>
    %48 = vector.shape_cast %47 : vector<8xf32> to vector<8x1xf32>
    %cst_15 = arith.constant 3.906250e-03 : f32
    %49 = vector.broadcast %cst_15 : f32 to vector<8x1xf32>
    %50 = arith.mulf %48, %49 : vector<8x1xf32>
    %51 = arith.mulf %45, %45 : vector<8x1xf32>
    %52 = arith.subf %50, %51 : vector<8x1xf32>
    %cst_16 = arith.constant 0.000000e+00 : f32
    %53 = vector.broadcast %cst_16 : f32 to vector<8x1xf32>
    %54 = arith.maximumf %52, %53 : vector<8x1xf32>
    %cst_17 = arith.constant 9.99999974E-6 : f32
    %55 = vector.broadcast %cst_17 : f32 to vector<8x1xf32>
    %56 = arith.addf %54, %55 : vector<8x1xf32>
    %57 = math.rsqrt %56 : vector<8x1xf32>
    %58 = arith.mulf %57, %22 : vector<8x1xf32>
    %59 = arith.mulf %45, %58 : vector<8x1xf32>
    %60 = arith.subf %23, %59 : vector<8x1xf32>
    %61 = vector.broadcast %58 : vector<8x1xf32> to vector<8x256xf32>
    %62 = arith.mulf %41, %61 : vector<8x256xf32>
    %63 = vector.broadcast %60 : vector<8x1xf32> to vector<8x256xf32>
    %64 = arith.addf %62, %63 : vector<8x256xf32>
    %cst_18 = arith.constant 0.000000e+00 : f32
    %65 = vector.broadcast %cst_18 : f32 to vector<8x256xf32>
    %66 = arith.maximumf %64, %65 : vector<8x256xf32>
    %c0_19 = arith.constant 0 : index
    %c0_20 = arith.constant 0 : index
    %67 = vector.load %arg2[%c0_19, %c0_20] : memref<8x24xf32, #tpu.memory_space<vmem>>, vector<8x24xf32>
    %c1_i32_21 = arith.constant 1 : i32
    %68 = tpu.dynamic_rotate %66 by %c1_i32_21 dim 1 : vector<8x256xf32>, i32 -> vector<8x256xf32>
    %cst_22 = arith.constant 0.000000e+00 : f32
    %69 = vector.shape_cast %18 : vector<1x256xi1> to vector<1x256xi1>
    %70 = vector.broadcast %69 : vector<1x256xi1> to vector<8x256xi1>
    %71 = vector.broadcast %cst_22 : f32 to vector<8x256xf32>
    %72 = arith.select %70, %68, %71 : vector<8x256xi1>, vector<8x256xf32>
    %c255_i32_23 = arith.constant 255 : i32
    %73 = tpu.dynamic_rotate %66 by %c255_i32_23 dim 1 : vector<8x256xf32>, i32 -> vector<8x256xf32>
    %cst_24 = arith.constant 0.000000e+00 : f32
    %74 = vector.shape_cast %20 : vector<1x256xi1> to vector<1x256xi1>
    %75 = vector.broadcast %74 : vector<1x256xi1> to vector<8x256xi1>
    %76 = vector.broadcast %cst_24 : f32 to vector<8x256xf32>
    %77 = arith.select %75, %73, %76 : vector<8x256xi1>, vector<8x256xf32>
    %78 = tpu.concatenate %72, %66, %77 in 0 : vector<8x256xf32>, vector<8x256xf32>, vector<8x256xf32> -> vector<24x256xf32>
    %cst_25 = arith.constant dense<0.000000e+00> : vector<8x256xf32>
    %79 = tpu.matmul %67, %78, %cst_25 {dimension_numbers = #tpu.dot_dimension_numbers<[1], [0], [0], [1], [0, 0, 1, 1], [], []>} : vector<8x24xf32>, vector<24x256xf32>, vector<8x256xf32> -> vector<8x256xf32>
    %cst_26 = arith.constant dense<0.000000e+00> : vector<8xf32>
    %80 = vector.multi_reduction <add>, %79, %cst_26 [1] : vector<8x256xf32> to vector<8xf32>
    %81 = vector.shape_cast %80 : vector<8xf32> to vector<8x1xf32>
    %cst_27 = arith.constant 3.906250e-03 : f32
    %82 = vector.broadcast %cst_27 : f32 to vector<8x1xf32>
    %83 = arith.mulf %81, %82 : vector<8x1xf32>
    %84 = arith.mulf %79, %79 : vector<8x256xf32>
    %cst_28 = arith.constant dense<0.000000e+00> : vector<8xf32>
    %85 = vector.multi_reduction <add>, %84, %cst_28 [1] : vector<8x256xf32> to vector<8xf32>
    %86 = vector.shape_cast %85 : vector<8xf32> to vector<8x1xf32>
    %cst_29 = arith.constant 3.906250e-03 : f32
    %87 = vector.broadcast %cst_29 : f32 to vector<8x1xf32>
    %88 = arith.mulf %86, %87 : vector<8x1xf32>
    %89 = arith.mulf %83, %83 : vector<8x1xf32>
    %90 = arith.subf %88, %89 : vector<8x1xf32>
    %cst_30 = arith.constant 0.000000e+00 : f32
    %91 = vector.broadcast %cst_30 : f32 to vector<8x1xf32>
    %92 = arith.maximumf %90, %91 : vector<8x1xf32>
    %cst_31 = arith.constant 9.99999974E-6 : f32
    %93 = vector.broadcast %cst_31 : f32 to vector<8x1xf32>
    %94 = arith.addf %92, %93 : vector<8x1xf32>
    %95 = math.rsqrt %94 : vector<8x1xf32>
    %96 = arith.mulf %95, %24 : vector<8x1xf32>
    %97 = arith.mulf %83, %96 : vector<8x1xf32>
    %98 = arith.subf %25, %97 : vector<8x1xf32>
    %99 = vector.broadcast %96 : vector<8x1xf32> to vector<8x256xf32>
    %100 = arith.mulf %79, %99 : vector<8x256xf32>
    %101 = vector.broadcast %98 : vector<8x1xf32> to vector<8x256xf32>
    %102 = arith.addf %100, %101 : vector<8x256xf32>
    %103 = tpu.concatenate %28, %28 in 0 : vector<4x256xf32>, vector<4x256xf32> -> vector<8x256xf32>
    %104 = arith.addf %102, %103 : vector<8x256xf32>
    %cst_32 = arith.constant dense<0.000000e+00> : vector<8xf32>
    %105 = vector.multi_reduction <add>, %104, %cst_32 [1] : vector<8x256xf32> to vector<8xf32>
    %106 = vector.shape_cast %105 : vector<8xf32> to vector<8x1xf32>
    %cst_33 = arith.constant 3.906250e-03 : f32
    %107 = vector.broadcast %cst_33 : f32 to vector<8x1xf32>
    %108 = arith.mulf %106, %107 : vector<8x1xf32>
    %109 = arith.mulf %104, %104 : vector<8x256xf32>
    %cst_34 = arith.constant dense<0.000000e+00> : vector<8xf32>
    %110 = vector.multi_reduction <add>, %109, %cst_34 [1] : vector<8x256xf32> to vector<8xf32>
    %111 = vector.shape_cast %110 : vector<8xf32> to vector<8x1xf32>
    %cst_35 = arith.constant 3.906250e-03 : f32
    %112 = vector.broadcast %cst_35 : f32 to vector<8x1xf32>
    %113 = arith.mulf %111, %112 : vector<8x1xf32>
    %114 = arith.mulf %108, %108 : vector<8x1xf32>
    %115 = arith.subf %113, %114 : vector<8x1xf32>
    %cst_36 = arith.constant 0.000000e+00 : f32
    %116 = vector.broadcast %cst_36 : f32 to vector<8x1xf32>
    %117 = arith.maximumf %115, %116 : vector<8x1xf32>
    %cst_37 = arith.constant 9.99999974E-6 : f32
    %118 = vector.broadcast %cst_37 : f32 to vector<8x1xf32>
    %119 = arith.addf %117, %118 : vector<8x1xf32>
    %120 = math.rsqrt %119 : vector<8x1xf32>
    %121 = arith.mulf %120, %26 : vector<8x1xf32>
    %122 = arith.mulf %108, %121 : vector<8x1xf32>
    %123 = arith.subf %27, %122 : vector<8x1xf32>
    %124 = vector.broadcast %121 : vector<8x1xf32> to vector<8x256xf32>
    %125 = arith.mulf %104, %124 : vector<8x256xf32>
    %126 = vector.broadcast %123 : vector<8x1xf32> to vector<8x256xf32>
    %127 = arith.addf %125, %126 : vector<8x256xf32>
    %cst_38 = arith.constant 0.000000e+00 : f32
    %128 = vector.broadcast %cst_38 : f32 to vector<8x256xf32>
    %129 = arith.maximumf %127, %128 : vector<8x256xf32>
    %c0_39 = arith.constant 0 : index
    %c0_40 = arith.constant 0 : index
    %130 = vector.load %arg4[%c0_39, %c0_40] : memref<8x256xf32, #tpu.memory_space<vmem>>, vector<8x256xf32>
    tpu.vector_store %arg4[%c0_39, %c0_40], %129 {strides = array<i32>} : memref<8x256xf32, #tpu.memory_space<vmem>>, vector<8x256xf32>,
    return
  }
}

</mosaic_0001>

<bundles_post_ra>
// kernel: tpu_custom_call.1
= control target key start
LH: loop header
LB: loop body
LE: loop exit
PB: predicated region body
PF: predicated region fallthrough
CT: control target
= control target key end

     0   :  { %9 = vsyncpa [#allocation3], 0  ;;  %s764_s0 = inlined_call_operand.hbm [shape: f32[4,256], index: 0, kind: input, shape index: {}]   ;;  %s765_s1 = inlined_call_operand.hbm [shape: f32[8,12], index: 1, kind: input, shape index: {}]   ;;  %s766_s2 = inlined_call_operand.hbm [shape: f32[8,24], index: 2, kind: input, shape index: {}]   ;;  %s767_s3 = inlined_call_operand.vmem [shape: f32[8,6], index: 3, kind: input, shape index: {}]   ;;  %s768_s4 = inlined_call_operand.hbm [shape: f32[8,256], index: 4, kind: output, shape index: {}]  }
   0x1   :  { %10 = vsyncpa [#allocation6], 0 }
   0x2   :  { %11 = vsyncpa [#allocation4], 0  ;;  %s586_s15 = smov [#allocation5]   ;;  %s587_s17 = smov [#allocation2]  }
   0x3   :  { %s28_s16 = sshll.u32 %s586_s15, 4  ;;  %s18_s18 = sshll.u32 %s587_s17, 4  ;;  %s29_s16 = int_to_ptr.vmem [resolvable:$true] %s28_s16  ;;  %s19_s18 = int_to_ptr.vmem [resolvable:$true] %s18_s18 }
   0x4   :  { %s492_s21 = scalar_lea.hbm %s765_s1, 128 }
   0x5   :  { %p493_p0 = scmp.ne.s32.totalorder %s765_s1, %s492_s21  ;;  %p496_p1 = scmp.lt.u32.totalorder %s492_s21, %s765_s1 }
   0x7   :  { %p498_p2 = pnand %p496_p1, %p493_p0 }
   0x9   :  { %501 = shalt.err (!%p498_p2)
}
   0xa   :  { %s502_s26 = scalar_lea.vmem %s29_s16, 128  ;;  %p507_p4 = scmp.lt.s32.totalorder %s29_s16, %s29_s16 }
   0xb   :  { %p503_p3 = scmp.ne.s32.totalorder %s29_s16, %s502_s26  ;;  %p508_p5 = scmp.lt.s32.totalorder %s502_s26, %s502_s26 }
   0xd   :  { %p509_p6 = por %p508_p5, %p507_p4 }
   0xf   :  { %p510_p7 = pnand %p509_p6, %p503_p3 }
  0x11   :  { %513 = shalt.err (!%p510_p7)
}
  0x12   :  { %31 = dma.hbm_to_vmem [thread:$0]  %s765_s1, 128, %s29_s16, [#allocation6]  }
  0x13   :  { %s514_s5 = scalar_lea.hbm %s764_s0, 128 }
  0x14   :  { %p515_p8 = scmp.ne.s32.totalorder %s764_s0, %s514_s5  ;;  %p518_p9 = scmp.lt.u32.totalorder %s514_s5, %s764_s0 }
  0x16   :  { %p520_p10 = pnand %p518_p9, %p515_p8 }
  0x18   :  { %523 = shalt.err (!%p520_p10)
}
  0x19   :  { %s524_s10 = scalar_lea.vmem %s19_s18, 128  ;;  %p529_p12 = scmp.lt.s32.totalorder %s19_s18, %s19_s18 }
  0x1a   :  { %p525_p11 = scmp.ne.s32.totalorder %s19_s18, %s524_s10  ;;  %p530_p13 = scmp.lt.s32.totalorder %s524_s10, %s524_s10 }
  0x1c   :  { %p531_p0 = por %p530_p13, %p529_p12 }
  0x1e   :  { %p532_p1 = pnand %p531_p0, %p525_p11 }
  0x20   :  { %535 = shalt.err (!%p532_p1)
}
  0x21   :  { %21 = dma.hbm_to_vmem [thread:$0]  %s764_s0, 128, %s19_s18, [#allocation3]  }
  0x22   :  { %s588_s12 = smov [#allocation7]   ;;  %s536_s16 = scalar_lea.hbm %s766_s2, 128 }
  0x23   :  { %s38_s13 = sshll.u32 %s588_s12, 4  ;;  %p537_p2 = scmp.ne.s32.totalorder %s766_s2, %s536_s16  ;;  %s39_s13 = int_to_ptr.vmem [resolvable:$true] %s38_s13 }
  0x24   :  { %p540_p3 = scmp.lt.u32.totalorder %s536_s16, %s766_s2 }
  0x26   :  { %p542_p4 = pnand %p540_p3, %p537_p2 }
  0x28   :  { %545 = shalt.err (!%p542_p4)
}
  0x29   :  { %s546_s22 = scalar_lea.vmem %s39_s13, 128  ;;  %p551_p6 = scmp.lt.s32.totalorder %s39_s13, %s39_s13 }
  0x2a   :  { %p547_p5 = scmp.ne.s32.totalorder %s39_s13, %s546_s22  ;;  %p552_p7 = scmp.lt.s32.totalorder %s546_s22, %s546_s22 }
  0x2c   :  { %p553_p8 = por %p552_p7, %p551_p6 }
  0x2e   :  { %p554_p9 = pnand %p553_p8, %p547_p5 }
  0x30   :  { %557 = shalt.err (!%p554_p9)
}
  0x31   :  { %41 = dma.hbm_to_vmem [thread:$0]  %s766_s2, 128, %s39_s13, [#allocation6]  }
  0x32   :  { %580 = dma.done.wait [#allocation3], 128  }
  0x33   :  { %581 = vsyncadd [#allocation3], 4294967168 }
  0x34   :  { %582 = dma.done.wait [#allocation6], 256  }
  0x35   :  { %583 = vsyncadd [#allocation6], 4294967040  ;;  %v661_v0 = vld [vmem:[#allocation2] sm:$0xff]  ;;  %v589_v3 = vmov 0.0   ;;  %s590_s23 = smov 1   ;;  %s591_s2 = smov 127   ;;  %v53_v4 = vlaneseq }
  0x36   :  { %v665_v1 = vcombine.high %v661_v0, %v661_v0  ;;  %195 = vmatprep.mubr.f32.mxu0 %v589_v3  ;;  %325 = vmatprep.mubr.f32.mxu1 %v589_v3  ;;  %vm118_vm3 = vcmask 1043456   ;;  %v691_v16 = vcombine.low %v661_v0, %v661_v0  ;;  %vm592_vm6 = vmmov 1   ;;  %v86_v29 = vld [vmem:[#allocation5] sm:$0xff]  ;;  %v714_v46 = vld [vmem:[%s767_s3] sm:$0xff]  ;;  %s599_s3 = smov [#allocation8]  }
  0x37   :  { %v671_v5 = vand.u32 127, %v53_v4  ;;  %vm437_vm7 = vmpackc.low %vm118_vm3, %vm592_vm6  ;;  %vm121_vm8 = vcmask 97280   ;;  %v593_v36 = vmov 0   ;;  %v594_v45 = vmov 1   ;;  %s418_s26 = sshll.u32 %s599_s3, 4  ;;  %s419_s26 = int_to_ptr.vmem [resolvable:$true] %s418_s26 }
  0x38   :  { %v462_v2 = vpack.i.bf16 %v665_v1, %v661_v0  ;;  %472 = vset.pattern.permute.xlu1 %v593_v36  ;;  %473 = vset.pattern.permute.xlu0 %v594_v45  ;;  %vm257_vm11 = vcmask 195584   ;;  %v368_v36 = vsel %vm118_vm3, %v661_v0, %v691_v16  ;;  %s558_s27 = scalar_lea.vmem %s419_s26, 256  ;;  %p563_p11 = scmp.lt.s32.totalorder %s419_s26, %s419_s26 }
  0x39   :  { %v55_v6 = vadd.s32 128, %v671_v5  ;;  %vm94_vm0 = vcmp.lt.s32.totalorder %v671_v5, 1  ;;  %vm80_vm2 = vcmp.ge.s32.totalorder %v671_v5, 1  ;;  %vm82_vm4 = vcmp.lt.s32.totalorder %v671_v5, 127  ;;  %p559_p10 = scmp.ne.s32.totalorder %s419_s26, %s558_s27  ;;  %p564_p12 = scmp.lt.s32.totalorder %s558_s27, %s558_s27 }
  0x3a   :  { %463 = vrot.lane.b32.xlu0 %v462_v2, %s590_s23  ;;  %vm446_vm10 = vmpackc.low %vm592_vm6, %vm80_vm2 }
  0x3b   :  { %v67_v7 = vand.u32 127, %v55_v6  ;;  %p565_p13 = por %p564_p12, %p563_p11 }
  0x3d   :  { %vm675_vm1 = vcmp.ge.s32.totalorder %v67_v7, 1  ;;  %vm685_vm5 = vcmp.lt.s32.totalorder %v67_v7, 127  ;;  %p566_p0 = pnand %p565_p13, %p559_p10 }
  0x3e   :  { %468 = vrot.lane.b32.xlu0 %v462_v2, %s591_s2  ;;  %vm443_vm9 = vmpackc.low %vm592_vm6, %vm675_vm1 }
  0xac   :  { %v464_v8 = vpop.permute.xlu0 %463 }
  0xad   :  { %v466_v9 = vunpack.i.h.bf16 %v464_v8  ;;  %v465_v10 = vunpack.i.l.bf16 %v464_v8 }
  0xaf   :  { %v96_v12 = vsel %vm94_vm0, %v466_v9, %v465_v10  ;;  %v95_v13 = vsel %vm94_vm0, %v465_v10, %v466_v9  ;;  %v240_v10 = vld [vmem:[#allocation7] sm:$0xff] }
  0xb0   :  { %v469_v14 = vpop.permute.xlu0 %468  ;;  %v102_v19 = vsel %vm675_vm1, %v95_v13, 0.0  ;;  %v101_v20 = vsel %vm80_vm2, %v96_v12, 0.0 }
  0xb1   :  { %v471_v17 = vunpack.i.h.bf16 %v469_v14  ;;  %v470_v18 = vunpack.i.l.bf16 %v469_v14  ;;  %v120_v24 = vsel %vm118_vm3, %v102_v19, %v661_v0  ;;  %v119_v26 = vsel %vm118_vm3, %v101_v20, %v691_v16 }
  0xb2   :  { %v595_v20 = vmov 2  }
  0xb3   :  { %v109_v21 = vsel %vm82_vm4, %v471_v17, %v470_v18  ;;  %v108_v22 = vsel %vm82_vm4, %v470_v18, %v471_v17 }
  0xb4   :  { %v115_v23 = vsel %vm685_vm5, %v109_v21, 0.0  ;;  %v114_v25 = vsel %vm82_vm4, %v108_v22, 0.0 }
  0xb5   :  { %v436_v27 = vpack.c.bf16 %v115_v23, %v120_v24  ;;  %v439_v28 = vpack.c.bf16 %v114_v25, %v119_v26 }
  0xb7   :  { %438 = vmatprep.subr.msk.bf16.mxu0 %vm437_vm7, %v436_v27  ;;  %v596_v27 = vmov 3  }
  0xb8   :  { %441 = vmatpush1.bf16.msk.msra.mxu0 %vm437_vm7, %v439_v28 }
  0xbb   :  { %430 = vmatmul.mubr.msk.f32.vlgmr.msra.gmra.mrb[0].mxu0 %vm121_vm8, %v86_v29 }
 0x18e   :  { %v197_v30 = vpop.f32.mrb[0].mxu0 }
 0x18f   :  { %v199_v31 = vpop.f32.mrb[1].mxu0  ;;  %v206_v32 = vmul.f32 %v197_v30, %v197_v30 }
 0x190   :  { %v207_v33 = vmul.f32 %v199_v31, %v199_v31  ;;  %v202_v34 = vadd.f32 %v199_v31, %v197_v30 }
 0x192   :  { %203 = vadd.xlane.f32.xlu1 %v202_v34  ;;  %v208_v35 = vadd.f32 %v207_v33, %v206_v32 }
 0x196   :  { %209 = vadd.xlane.f32.xlu1 %v208_v35 }
 0x21f   :  { %v204_v37 = vpop.xlane.xlu1 %203 }
 0x220   :  { %v205_v38 = vmul.f32 0.00390625, %v204_v37  ;;  %v369_v37 = vsel %vm118_vm3, %v665_v1, %v661_v0 }
 0x222   :  { %v212_v40 = vmul.f32 %v205_v38, %v205_v38 }
 0x223   :  { %v210_v39 = vpop.xlane.xlu1 %209 }
 0x224   :  { %v211_v41 = vmul.f32 0.00390625, %v210_v39 }
 0x226   :  { %v213_v42 = vsub.f32 %v211_v41, %v212_v40 }
 0x228   :  { %v214_v43 = vmax.f32 %v213_v42, 0.0 }
 0x22a   :  { %v215_v44 = vadd.f32 1e-05, %v214_v43 }
 0x22c   :  { %486 = vrsqrt.f32 %v215_v44 }
 0x236   :  { %v487_v47 = vpop.eup %486 }
 0x237   :  { %v217_v48 = vmul.f32 %v487_v47, %v714_v46 }
 0x239   :  { %226 = vperm.xlu1 %472, %v217_v48   ;;  %v218_v49 = vmul.f32 %v217_v48, %v205_v38  ;;  %v597_v48 = vmov 4  }
 0x23b   :  { %220 = vrot.lane.b32.xlu0 %v218_v49, %s590_s23 }
 0x23d   :  { %479 = vset.pattern.permute.xlu1 %v595_v20 }
 0x2ad   :  { %v221_v50 = vpop.permute.xlu0 %220 }
 0x2ae   :  { %v223_v51 = vsub.f32 %v714_v46, %v221_v50 }
 0x2b0   :  { %233 = vperm.xlu0 %473, %v223_v51  }
 0x2b4   :  { %480 = vset.pattern.permute.xlu0 %v596_v27 }
 0x2b8   :  { %v227_v52 = vpop.permute.xlu1 %226 }
 0x2b9   :  { %v229_v53 = vmul.f32 %v227_v52, %v197_v30  ;;  %v230_v54 = vmul.f32 %v227_v52, %v199_v31 }
 0x32f   :  { %v234_v55 = vpop.permute.xlu0 %233 }
 0x330   :  { %v236_v56 = vadd.f32 %v234_v55, %v229_v53  ;;  %v237_v57 = vadd.f32 %v234_v55, %v230_v54  ;;  %v598_v54 = vmov 5  }
 0x332   :  { %v238_v58 = vmax.f32 %v236_v56, 0.0  ;;  %v239_v59 = vmax.f32 %v237_v57, 0.0 }
 0x334   :  { %251 = vrot.lane.b32.xlu1 %v239_v59, %s591_s2  ;;  %v474_v60 = vpack.i.bf16 %v239_v59, %v238_v58 }
 0x336   :  { %475 = vrot.lane.b32.xlu0 %v474_v60, %s590_s23 }
 0x33a   :  { %249 = vrot.lane.b32.xlu0 %v238_v58, %s591_s2 }
 0x3a6   :  { %v252_v8 = vpop.permute.xlu1 %251 }
 0x3a8   :  { %v476_v61 = vpop.permute.xlu0 %475 }
 0x3a9   :  { %v478_v62 = vunpack.i.h.bf16 %v476_v61  ;;  %v477_v63 = vunpack.i.l.bf16 %v476_v61 }
 0x3ab   :  { %v245_v2 = vsel %vm94_vm0, %v477_v63, %v478_v62  ;;  %v246_v3 = vsel %vm94_vm0, %v478_v62, %v477_v63 }
 0x3ac   :  { %v250_v4 = vpop.permute.xlu0 %249  ;;  %v442_v6 = vpack.c.bf16 %v239_v59, %v245_v2  ;;  %v445_v7 = vpack.c.bf16 %v238_v58, %v246_v3 }
 0x3ad   :  { %v254_v9 = vsel %vm82_vm4, %v252_v8, %v250_v4  ;;  %v253_v11 = vsel %vm82_vm4, %v250_v4, %v252_v8 }
 0x3ae   :  { %444 = vmatprep.subr.msk.bf16.mxu1 %vm443_vm9, %v442_v6 }
 0x3af   :  { %447 = vmatpush1.bf16.msk.msra.mxu1 %vm446_vm10, %v445_v7 }
 0x3b0   :  { %433 = vmatprep.subr.msk.mxu1 %vm685_vm5, %v254_v9 }
 0x3b3   :  { %434 = vmatpush1.msk.msra.mxu1 %vm82_vm4, %v253_v11 }
 0x3b4   :  { %435 = vmatmul.mubr.msk.f32.vlgmr.msra.gmra.mrb[0].mxu1 %vm257_vm11, %v240_v10 }
 0x487   :  { %v327_v12 = vpop.f32.mrb[0].mxu1 }
 0x488   :  { %v329_v13 = vpop.f32.mrb[1].mxu1  ;;  %v336_v14 = vmul.f32 %v327_v12, %v327_v12 }
 0x489   :  { %v337_v17 = vmul.f32 %v329_v13, %v329_v13  ;;  %v332_v18 = vadd.f32 %v329_v13, %v327_v12 }
 0x48b   :  { %333 = vadd.xlane.f32.xlu0 %v332_v18  ;;  %v338_v19 = vadd.f32 %v337_v17, %v336_v14 }
 0x48d   :  { %339 = vadd.xlane.f32.xlu1 %v338_v19 }
 0x518   :  { %v334_v15 = vpop.xlane.xlu0 %333 }
 0x519   :  { %v335_v21 = vmul.f32 0.00390625, %v334_v15 }
 0x51a   :  { %v340_v22 = vpop.xlane.xlu1 %339 }
 0x51b   :  { %v342_v23 = vmul.f32 %v335_v21, %v335_v21  ;;  %v341_v24 = vmul.f32 0.00390625, %v340_v22 }
 0x51d   :  { %v343_v25 = vsub.f32 %v341_v24, %v342_v23 }
 0x51f   :  { %v344_v26 = vmax.f32 %v343_v25, 0.0 }
 0x521   :  { %v345_v5 = vadd.f32 1e-05, %v344_v26 }
 0x523   :  { %488 = vrsqrt.f32 %v345_v5 }
 0x52d   :  { %v489_v28 = vpop.eup %488 }
 0x52e   :  { %v347_v29 = vmul.f32 %v489_v28, %v714_v46 }
 0x530   :  { %356 = vperm.xlu1 %479, %v347_v29   ;;  %v348_v30 = vmul.f32 %v347_v29, %v335_v21 }
 0x532   :  { %350 = vrot.lane.b32.xlu0 %v348_v30, %s590_s23 }
 0x534   :  { %482 = vset.pattern.permute.xlu1 %v598_v54 }
 0x5a4   :  { %v351_v31 = vpop.permute.xlu0 %350 }
 0x5a5   :  { %v353_v32 = vsub.f32 %v714_v46, %v351_v31 }
 0x5a7   :  { %363 = vperm.xlu0 %480, %v353_v32  }
 0x5ab   :  { %481 = vset.pattern.permute.xlu0 %v597_v48 }
 0x5af   :  { %v357_v33 = vpop.permute.xlu1 %356 }
 0x5b0   :  { %v359_v34 = vmul.f32 %v357_v33, %v327_v12  ;;  %v360_v35 = vmul.f32 %v357_v33, %v329_v13 }
 0x626   :  { %v364_v38 = vpop.permute.xlu0 %363 }
 0x627   :  { %v366_v39 = vadd.f32 %v364_v38, %v359_v34  ;;  %v367_v40 = vadd.f32 %v364_v38, %v360_v35 }
 0x629   :  { %v370_v41 = vadd.f32 %v368_v36, %v366_v39  ;;  %v371_v42 = vadd.f32 %v369_v37, %v367_v40 }
 0x62b   :  { %v372_v43 = vadd.f32 %v371_v42, %v370_v41  ;;  %v376_v44 = vmul.f32 %v370_v41, %v370_v41  ;;  %v377_v45 = vmul.f32 %v371_v42, %v371_v42 }
 0x62d   :  { %373 = vadd.xlane.f32.xlu1 %v372_v43  ;;  %v378_v47 = vadd.f32 %v377_v45, %v376_v44 }
 0x62f   :  { %379 = vadd.xlane.f32.xlu0 %v378_v47 }
 0x6ba   :  { %v374_v49 = vpop.xlane.xlu1 %373 }
 0x6bb   :  { %v375_v50 = vmul.f32 0.00390625, %v374_v49 }
 0x6bc   :  { %v380_v16 = vpop.xlane.xlu0 %379 }
 0x6bd   :  { %v382_v51 = vmul.f32 %v375_v50, %v375_v50  ;;  %v381_v52 = vmul.f32 0.00390625, %v380_v16 }
 0x6bf   :  { %v383_v53 = vsub.f32 %v381_v52, %v382_v51 }
 0x6c1   :  { %v384_v0 = vmax.f32 %v383_v53, 0.0 }
 0x6c3   :  { %v385_v1 = vadd.f32 1e-05, %v384_v0 }
 0x6c5   :  { %490 = vrsqrt.f32 %v385_v1 }
 0x6cf   :  { %v491_v55 = vpop.eup %490 }
 0x6d0   :  { %v387_v56 = vmul.f32 %v491_v55, %v714_v46 }
 0x6d2   :  { %396 = vperm.xlu0 %481, %v387_v56   ;;  %v388_v57 = vmul.f32 %v387_v56, %v375_v50 }
 0x6d4   :  { %390 = vrot.lane.b32.xlu1 %v388_v57, %s590_s23 }
 0x6d6   :  { %483 = vset.pattern.permute.xlu0 %v598_v54 }
 0x746   :  { %v391_v58 = vpop.permute.xlu1 %390 }
 0x747   :  { %v393_v59 = vsub.f32 %v714_v46, %v391_v58 }
 0x749   :  { %403 = vperm.xlu1 %482, %v393_v59  }
 0x751   :  { %v397_v60 = vpop.permute.xlu0 %396 }
 0x752   :  { %v399_v61 = vmul.f32 %v397_v60, %v370_v41  ;;  %v400_v62 = vmul.f32 %v397_v60, %v371_v42 }
 0x7c8   :  { %v404_v63 = vpop.permute.xlu1 %403 }
 0x7c9   :  { %v406_v2 = vadd.f32 %v404_v63, %v399_v61  ;;  %v407_v3 = vadd.f32 %v404_v63, %v400_v62 }
 0x7cb   :  { %v408_v4 = vmax.f32 %v406_v2, 0.0  ;;  %v409_v6 = vmax.f32 %v407_v3, 0.0 }
 0x7cd   :  { %410 = vst [vmem:[#allocation8] sm:$0xff] %v408_v4  ;;  %411 = vst [vmem:[#allocation8 + $0x8] sm:$0xff] %v409_v6 }
 0x7ce   :  { %569 = shalt.err (!%p566_p0)
}
 0x7cf   :  { %s570_s30 = scalar_lea.hbm %s768_s4, 256 }
 0x7d0   :  { %p571_p1 = scmp.ne.s32.totalorder %s768_s4, %s570_s30  ;;  %p574_p2 = scmp.lt.u32.totalorder %s570_s30, %s768_s4 }
 0x7d2   :  { %p576_p3 = pnand %p574_p2, %p571_p1 }
 0x7d4   :  { %579 = shalt.err (!%p576_p3)
}
 0x7d5   :  { %421 = dma.vmem_to_hbm [thread:$0]  %s419_s26, 256, %s768_s4, [#allocation4]  }
 0x7d6   :  { %584 = dma.done.wait [#allocation4], 256  }
 0x7d7   :  { %585 = vsyncadd [#allocation4], 4294967040 }
 0x7d8   :  { %425 = vsyncpa [#allocation3], 1 }
 0x7d9   :  { %426 = vsyncpa [#allocation6], 1 }
 0x7da   :  { %427 = vsyncpa [#allocation4], 1 }

</bundles_post_ra>
